<compile_context>
chip_gen: v5e
topology: v5e:2x2
jax: 0.10.0
libtpu: 0.0.40
codegen_flags: <defaults>
</compile_context>

<pallas_src>
import jax
import jax.numpy as jnp
from jax.experimental import pallas as pl
from jax.experimental.pallas import tpu as pltpu

EPS = 1e-5
MXU_DTYPE = jnp.bfloat16             # matmul input dtype (f32 accumulation)
X1_DTYPE = jnp.bfloat16              # dtype of the x1 intermediate in HBM
VMEM_LIMIT = 40 * 1024 * 1024        # scoped VMEM: safe on v7x (64 MiB phys),
                                     # well above v5e's 16 MiB scoped default
ACT_BLOCK_BUDGET = 4 * 1024 * 1024   # f32 bytes per activation block copy


# ----------------------------------------------------------------------------
# Kernels
# ----------------------------------------------------------------------------
def bn_partials_kernel(x_ref, s1_ref, s2_ref):
    """Per-block, per-(t,f) sum and sum-of-squares over the batch axis.

    Accumulators stay lane-dense (1, T*F); the cheap cross-lane (over f)
    reduction and the scale/shift math happen once outside on tiny arrays."""
    x = x_ref[...].astype(jnp.float32)                       # (bb, T*F)
    s1_ref[...] = jnp.sum(x, axis=0, keepdims=True).reshape(1, 1, -1)
    s2_ref[...] = jnp.sum(x * x, axis=0, keepdims=True).reshape(1, 1, -1)


def time_mix_kernel(x_ref, scale_ref, shift_ref, w_ref, b_ref,
                    o_ref, s1_ref, s2_ref):
    """BN1 affine + time-mixing MLP (+ReLU) + residual on a lane-dense
    (bb, T*F) block as ONE MXU matmul against the Kronecker-expanded
    (T*F, T*F) time weight.  Also emits per-block BN2 partial statistics of
    the produced activation (fuses the second bn-stats pass)."""
    x = x_ref[...]                                           # (bb, T*F) f32
    xn = (x * scale_ref[...] + shift_ref[...]).astype(MXU_DTYPE)
    y = jnp.dot(xn, w_ref[...], preferred_element_type=jnp.float32)
    y = jnp.maximum(y + b_ref[...], 0.0) + x                 # ReLU + residual
    o_ref[...] = y.astype(o_ref.dtype)                       # bf16 store
    s1_ref[...] = jnp.sum(y, axis=0, keepdims=True).reshape(1, 1, -1)
    s2_ref[...] = jnp.sum(y * y, axis=0, keepdims=True).reshape(1, 1, -1)


def feat_mix_kernel(x_ref, scale_ref, shift_ref,
                    w1_ref, b1_ref, w2_ref, b2_ref, o_ref):
    """BN2 affine + feature MLP (fc1 -> ReLU -> fc2) + residual on a
    lane-dense (bb, T*F) block.  The feature matmuls use the block-diagonal
    (T*F, T*F) expansion of the (F, F) weights, so no in-kernel relayout."""
    x = x_ref[...].astype(jnp.float32)                       # (bb, T*F)
    xn = (x * scale_ref[...] + shift_ref[...]).astype(MXU_DTYPE)
    h = jnp.dot(xn, w1_ref[...], preferred_element_type=jnp.float32) + b1_ref[...]
    h = jnp.maximum(h, 0.0).astype(MXU_DTYPE)
    y = jnp.dot(h, w2_ref[...], preferred_element_type=jnp.float32) + b2_ref[...]
    o_ref[...] = (y + x).astype(o_ref.dtype)


# ----------------------------------------------------------------------------
# pallas_call wrappers
# ----------------------------------------------------------------------------
def _compiler_params():
    return pltpu.CompilerParams(dimension_semantics=("parallel",),
                                vmem_limit_bytes=VMEM_LIMIT)


def _bn_partials(x2, bb):
    B, TF = x2.shape
    nb = B // bb
    return pl.pallas_call(
        bn_partials_kernel,
        grid=(nb,),
        in_specs=[pl.BlockSpec((bb, TF), lambda i: (i, 0))],
        out_specs=[pl.BlockSpec((1, 1, TF), lambda i: (i, 0, 0)),
                   pl.BlockSpec((1, 1, TF), lambda i: (i, 0, 0))],
        out_shape=[jax.ShapeDtypeStruct((nb, 1, TF), jnp.float32),
                   jax.ShapeDtypeStruct((nb, 1, TF), jnp.float32)],
        compiler_params=_compiler_params(),
    )(x2)


def _time_mix(x2, scale, shift, w_big, b_row, bb):
    B, TF = x2.shape
    nb = B // bb
    return pl.pallas_call(
        time_mix_kernel,
        grid=(nb,),
        in_specs=[
            pl.BlockSpec((bb, TF), lambda i: (i, 0)),
            pl.BlockSpec((1, TF), lambda i: (0, 0)),
            pl.BlockSpec((1, TF), lambda i: (0, 0)),
            pl.BlockSpec((TF, TF), lambda i: (0, 0)),
            pl.BlockSpec((1, TF), lambda i: (0, 0)),
        ],
        out_specs=[
            pl.BlockSpec((bb, TF), lambda i: (i, 0)),
            pl.BlockSpec((1, 1, TF), lambda i: (i, 0, 0)),
            pl.BlockSpec((1, 1, TF), lambda i: (i, 0, 0)),
        ],
        out_shape=[
            jax.ShapeDtypeStruct((B, TF), X1_DTYPE),
            jax.ShapeDtypeStruct((nb, 1, TF), jnp.float32),
            jax.ShapeDtypeStruct((nb, 1, TF), jnp.float32),
        ],
        compiler_params=_compiler_params(),
    )(x2, scale, shift, w_big, b_row)


def _feat_mix(x1, scale, shift, w1_big, b1_row, w2_big, b2_row, bb, out_dtype):
    B, TF = x1.shape
    nb = B // bb
    return pl.pallas_call(
        feat_mix_kernel,
        grid=(nb,),
        in_specs=[
            pl.BlockSpec((bb, TF), lambda i: (i, 0)),
            pl.BlockSpec((1, TF), lambda i: (0, 0)),
            pl.BlockSpec((1, TF), lambda i: (0, 0)),
            pl.BlockSpec((TF, TF), lambda i: (0, 0)),
            pl.BlockSpec((1, TF), lambda i: (0, 0)),
            pl.BlockSpec((TF, TF), lambda i: (0, 0)),
            pl.BlockSpec((1, TF), lambda i: (0, 0)),
        ],
        out_specs=pl.BlockSpec((bb, TF), lambda i: (i, 0)),
        out_shape=jax.ShapeDtypeStruct((B, TF), out_dtype),
        compiler_params=_compiler_params(),
    )(x1, scale, shift, w1_big, b1_row, w2_big, b2_row)


# ----------------------------------------------------------------------------
# Helpers (tiny, plain JAX)
# ----------------------------------------------------------------------------
def _pick_block_b(B, TF):
    """Largest divisor of B that (a) keeps one f32 activation block within the
    per-copy budget, (b) satisfies the sublane constraint (multiple of 8 or
    the full batch), and (c) when possible leaves >=2 grid steps so the
    'parallel' axis can split across both TensorCores on v7x."""
    max_bb = max(1, ACT_BLOCK_BUDGET // (TF * 4))
    cands = [d for d in range(1, B + 1)
             if B % d == 0 and d <= max_bb and (d % 8 == 0 or d == B)]
    if not cands:
        return B
    multi = [d for d in cands if d <= B // 2]
    return max(multi) if multi else max(cands)


def _bn_scale_shift(s1_parts, s2_parts, gamma, beta, inv_count, T, F):
    """Combine per-block (t,f) partial sums into per-t fused BN scale/shift
    (scale = gamma*rsqrt(var+eps), shift = beta - mean*scale), expanded to
    lane-dense (1, T*F) rows.  Arrays are tiny, so plain JAX is fine."""
    s1 = jnp.sum(s1_parts, axis=(0, 1)).reshape(T, F).sum(axis=1)    # (T,)
    s2 = jnp.sum(s2_parts, axis=(0, 1)).reshape(T, F).sum(axis=1)
    mean = s1 * inv_count
    # Single-pass variance (E[x^2] - mean^2): fine for O(1)-mean activations.
    var = s2 * inv_count - mean * mean
    g = gamma * jax.lax.rsqrt(var + EPS)
    scale_row = jnp.repeat(g, F).reshape(1, T * F)
    shift_row = jnp.repeat(beta - mean * g, F).reshape(1, T * F)
    return scale_row, shift_row


def mixer_layer(x, params, block_b=None):
    """x: (B, T, F) float32.  Returns (B, T, F) float32."""
    B, T, F = x.shape
    TF = T * F
    bb = _pick_block_b(B, TF) if block_b is None else block_b
    assert B % bb == 0, "block_b must divide the batch size"

    # --- one-time parameter prep (tiny) --------------------------------------
    gamma = params['bn_w'].astype(jnp.float32)
    beta = params['bn_b'].astype(jnp.float32)
    eye_f = jnp.eye(F, dtype=jnp.float32)
    eye_t = jnp.eye(T, dtype=jnp.float32)
    # Expanded weights: the time mix and the feature MLP become plain 2-D
    # matmuls on the native row-major (B, T*F) view.
    wt_big = jnp.kron(params['w_time'], eye_f).astype(MXU_DTYPE)      # (TF, TF)
    bt_row = jnp.repeat(params['b_time'], F).reshape(1, TF).astype(jnp.float32)
    w1_big = jnp.kron(eye_t, params['w_feat1']).astype(MXU_DTYPE)     # block-diag
    b1_row = jnp.tile(params['b_feat1'], T).reshape(1, TF).astype(jnp.float32)
    w2_big = jnp.kron(eye_t, params['w_feat2']).astype(MXU_DTYPE)
    b2_row = jnp.tile(params['b_feat2'], T).reshape(1, TF).astype(jnp.float32)

    x2 = x.reshape(B, TF)                        # free row-major view
    inv_count = 1.0 / (B * F)

    # --- time mixing: BN1 stats -> BN1 affine + MLP_time + residual ----------
    s1p, s2p = _bn_partials(x2, bb)
    scale1, shift1 = _bn_scale_shift(s1p, s2p, gamma, beta, inv_count, T, F)
    x1, t1p, t2p = _time_mix(x2, scale1, shift1, wt_big, bt_row, bb)

    # --- feature mixing: BN2 stats came fused out of time_mix ----------------
    scale2, shift2 = _bn_scale_shift(t1p, t2p, gamma, beta, inv_count, T, F)
    out2 = _feat_mix(x1, scale2, shift2, w1_big, b1_row, w2_big, b2_row, bb,
                     x.dtype)
    return out2.reshape(B, T, F)


# ----------------------------------------------------------------------------
# Params + pure-JAX reference
# ----------------------------------------------------------------------------
def init_params(key, time_dim, feat_dim):
    ks = jax.random.split(key, 8)
    s_t = 1.0 / jnp.sqrt(time_dim)
    s_f = 1.0 / jnp.sqrt(feat_dim)
    return {
        'bn_w': 1.0 + 0.1 * jax.random.normal(ks[0], (time_dim,), jnp.float32),
        'bn_b': 0.1 * jax.random.normal(ks[1], (time_dim,), jnp.float32),
        # MLP_time.fc1: Linear(time_dim, time_dim), stored as (in, out)
        'w_time': jax.random.uniform(ks[2], (time_dim, time_dim), jnp.float32, -s_t, s_t),
        'b_time': jax.random.uniform(ks[3], (time_dim,), jnp.float32, -s_t, s_t),
        # MLP_feat.fc1 / fc2: Linear(feat_dim, feat_dim), stored as (in, out)
        'w_feat1': jax.random.uniform(ks[4], (feat_dim, feat_dim), jnp.float32, -s_f, s_f),
        'b_feat1': jax.random.uniform(ks[5], (feat_dim,), jnp.float32, -s_f, s_f),
        'w_feat2': jax.random.uniform(ks[6], (feat_dim, feat_dim), jnp.float32, -s_f, s_f),
        'b_feat2': jax.random.uniform(ks[7], (feat_dim,), jnp.float32, -s_f, s_f),
    }


def mixer_layer_ref(x, p):
    """Pure-JAX f32 reference (same math) used for correctness checking."""
    def bn(v):
        m = jnp.mean(v, axis=(0, 2), keepdims=True)
        var = jnp.mean((v - m) ** 2, axis=(0, 2), keepdims=True)
        return (v - m) / jnp.sqrt(var + EPS) * p['bn_w'][None, :, None] \
               + p['bn_b'][None, :, None]

    res1 = x
    xn = bn(x)
    xt = jnp.einsum('btf,ts->bsf', xn, p['w_time']) + p['b_time'][None, :, None]
    x = jnp.maximum(xt, 0.0) + res1
    res2 = x
    xn2 = bn(x)
    h = jnp.maximum(jnp.einsum('btf,fg->btg', xn2, p['w_feat1'])
                    + p['b_feat1'][None, None, :], 0.0)
    y = jnp.einsum('btg,gh->bth', h, p['w_feat2']) + p['b_feat2'][None, None, :]
    return y + res2


if __name__ == "__main__":
    # T*F = 128 -> fully lane-dense blocks; B=256 gives bb=128, nb=2 so the
    # multi-block (parallel) path and the fused BN2 partial-sum combine are
    # both exercised.
    B, TIME_DIM, FEAT_DIM = 256, 8, 16

    key = jax.random.PRNGKey(0)
    kx, kp = jax.random.split(key)
    x = jax.random.normal(kx, (B, TIME_DIM, FEAT_DIM), jnp.float32)
    params = init_params(kp, TIME_DIM, FEAT_DIM)

    fwd = jax.jit(mixer_layer)
    out = jax.block_until_ready(fwd(x, params))

    ref = mixer_layer_ref(x, params)
    assert out.shape == (B, TIME_DIM, FEAT_DIM)
    max_err = float(jnp.max(jnp.abs(out - ref)))
    # bf16 MXU inputs + bf16 x1 intermediate vs the pure-f32 reference:
    # expected max abs error of a few 1e-2 at these O(1) magnitudes.
    assert jnp.allclose(out, ref, atol=1e-1, rtol=1e-1), \
        f"mismatch vs JAX reference (max abs err {max_err:.3e})"

    print("KERNEL_OK")
</pallas_src>

<mosaic_0001>
module attributes {stable_mosaic.version = 11 : i64} {
  func.func @bn_partials_kernel(%arg0: i32, %arg1: memref<128x128xf32, #tpu.memory_space<vmem>>, %arg2: memref<1x1x128xf32, #tpu.memory_space<vmem>>, %arg3: memref<1x1x128xf32, #tpu.memory_space<vmem>>) attributes {dimension_semantics = [#tpu.dimension_semantics<parallel>], iteration_bounds = array<i64: 2>, scalar_prefetch = 0 : i64, scratch_operands = 0 : i64, tpu.core_type = #tpu.core_type<tc>, window_params = [{transform_indices = @transform_0, window_bounds = array<i64: 128, 128>}, {transform_indices = @transform_1, window_bounds = array<i64: 1, 1, 128>}, {transform_indices = @transform_2, window_bounds = array<i64: 1, 1, 128>}]} {
    %c0 = arith.constant 0 : index
    %c0_0 = arith.constant 0 : index
    %0 = vector.load %arg1[%c0, %c0_0] : memref<128x128xf32, #tpu.memory_space<vmem>>, vector<128x128xf32>
    %cst = arith.constant dense<0.000000e+00> : vector<128xf32>
    %1 = vector.multi_reduction <add>, %0, %cst [0] : vector<128x128xf32> to vector<128xf32>
    %2 = vector.shape_cast %1 : vector<128xf32> to vector<1x128xf32>
    %3 = vector.shape_cast %2 : vector<1x128xf32> to vector<1x1x128xf32>
    %c0_1 = arith.constant 0 : index
    %c0_2 = arith.constant 0 : index
    %c0_3 = arith.constant 0 : index
    %4 = vector.load %arg2[%c0_1, %c0_2, %c0_3] : memref<1x1x128xf32, #tpu.memory_space<vmem>>, vector<1x1x128xf32>
    tpu.vector_store %arg2[%c0_1, %c0_2, %c0_3], %3 {strides = array<i32>} : memref<1x1x128xf32, #tpu.memory_space<vmem>>, vector<1x1x128xf32>,
    %5 = arith.mulf %0, %0 : vector<128x128xf32>
    %cst_4 = arith.constant dense<0.000000e+00> : vector<128xf32>
    %6 = vector.multi_reduction <add>, %5, %cst_4 [0] : vector<128x128xf32> to vector<128xf32>
    %7 = vector.shape_cast %6 : vector<128xf32> to vector<1x128xf32>
    %8 = vector.shape_cast %7 : vector<1x128xf32> to vector<1x1x128xf32>
    %c0_5 = arith.constant 0 : index
    %c0_6 = arith.constant 0 : index
    %c0_7 = arith.constant 0 : index
    %9 = vector.load %arg3[%c0_5, %c0_6, %c0_7] : memref<1x1x128xf32, #tpu.memory_space<vmem>>, vector<1x1x128xf32>
    tpu.vector_store %arg3[%c0_5, %c0_6, %c0_7], %8 {strides = array<i32>} : memref<1x1x128xf32, #tpu.memory_space<vmem>>, vector<1x1x128xf32>,
    return
  }
  func.func @transform_0(%arg0: i32) -> (i32, i32) {
    %c0_i32 = arith.constant 0 : i32
    %c0_i32_0 = arith.constant 0 : i32
    return %arg0, %c0_i32 : i32, i32
  }
  func.func @transform_1(%arg0: i32) -> (i32, i32, i32) {
    %c0_i32 = arith.constant 0 : i32
    %c0_i32_0 = arith.constant 0 : i32
    %c0_i32_1 = arith.constant 0 : i32
    return %arg0, %c0_i32, %c0_i32_0 : i32, i32, i32
  }
  func.func @transform_2(%arg0: i32) -> (i32, i32, i32) {
    %c0_i32 = arith.constant 0 : i32
    %c0_i32_0 = arith.constant 0 : i32
    %c0_i32_1 = arith.constant 0 : i32
    return %arg0, %c0_i32, %c0_i32_0 : i32, i32, i32
  }
}

module attributes {stable_mosaic.version = 11 : i64} {
  func.func @time_mix_kernel(%arg0: i32, %arg1: memref<128x128xf32, #tpu.memory_space<vmem>>, %arg2: memref<1x128xf32, #tpu.memory_space<vmem>>, %arg3: memref<1x128xf32, #tpu.memory_space<vmem>>, %arg4: memref<128x128xbf16, #tpu.memory_space<vmem>>, %arg5: memref<1x128xf32, #tpu.memory_space<vmem>>, %arg6: memref<128x128xbf16, #tpu.memory_space<vmem>>, %arg7: memref<1x1x128xf32, #tpu.memory_space<vmem>>, %arg8: memref<1x1x128xf32, #tpu.memory_space<vmem>>) attributes {dimension_semantics = [#tpu.dimension_semantics<parallel>], iteration_bounds = array<i64: 2>, scalar_prefetch = 0 : i64, scratch_operands = 0 : i64, tpu.core_type = #tpu.core_type<tc>, window_params = [{transform_indices = @transform_0, window_bounds = array<i64: 128, 128>}, {pipeline_mode = #tpu.pipeline_mode<synchronous>, transform_indices = @transform_1, window_bounds = array<i64: 1, 128>}, {pipeline_mode = #tpu.pipeline_mode<synchronous>, transform_indices = @transform_2, window_bounds = array<i64: 1, 128>}, {pipeline_mode = #tpu.pipeline_mode<synchronous>, transform_indices = @transform_3, window_bounds = array<i64: 128, 128>}, {pipeline_mode = #tpu.pipeline_mode<synchronous>, transform_indices = @transform_4, window_bounds = array<i64: 1, 128>}, {transform_indices = @transform_5, window_bounds = array<i64: 128, 128>}, {transform_indices = @transform_6, window_bounds = array<i64: 1, 1, 128>}, {transform_indices = @transform_7, window_bounds = array<i64: 1, 1, 128>}]} {
    %c0 = arith.constant 0 : index
    %c0_0 = arith.constant 0 : index
    %0 = vector.load %arg1[%c0, %c0_0] : memref<128x128xf32, #tpu.memory_space<vmem>>, vector<128x128xf32>
    %c0_1 = arith.constant 0 : index
    %c0_2 = arith.constant 0 : index
    %1 = vector.load %arg2[%c0_1, %c0_2] : memref<1x128xf32, #tpu.memory_space<vmem>>, vector<1x128xf32>
    %2 = vector.broadcast %1 : vector<1x128xf32> to vector<128x128xf32>
    %3 = arith.mulf %0, %2 : vector<128x128xf32>
    %c0_3 = arith.constant 0 : index
    %c0_4 = arith.constant 0 : index
    %4 = vector.load %arg3[%c0_3, %c0_4] : memref<1x128xf32, #tpu.memory_space<vmem>>, vector<1x128xf32>
    %5 = vector.broadcast %4 : vector<1x128xf32> to vector<128x128xf32>
    %6 = arith.addf %3, %5 : vector<128x128xf32>
    %7 = arith.truncf %6 : vector<128x128xf32> to vector<128x128xbf16>
    %c0_5 = arith.constant 0 : index
    %c0_6 = arith.constant 0 : index
    %8 = vector.load %arg4[%c0_5, %c0_6] : memref<128x128xbf16, #tpu.memory_space<vmem>>, vector<128x128xbf16>
    %cst = arith.constant dense<0.000000e+00> : vector<128x128xf32>
    %9 = tpu.matmul %7, %8, %cst {dimension_numbers = #tpu.dot_dimension_numbers<[1], [0], [0], [1], [0, 0, 1, 1], [], []>} : vector<128x128xbf16>, vector<128x128xbf16>, vector<128x128xf32> -> vector<128x128xf32>
    %c0_7 = arith.constant 0 : index
    %c0_8 = arith.constant 0 : index
    %10 = vector.load %arg5[%c0_7, %c0_8] : memref<1x128xf32, #tpu.memory_space<vmem>>, vector<1x128xf32>
    %11 = vector.broadcast %10 : vector<1x128xf32> to vector<128x128xf32>
    %12 = arith.addf %9, %11 : vector<128x128xf32>
    %cst_9 = arith.constant 0.000000e+00 : f32
    %13 = vector.broadcast %cst_9 : f32 to vector<128x128xf32>
    %14 = arith.maximumf %12, %13 : vector<128x128xf32>
    %15 = arith.addf %14, %0 : vector<128x128xf32>
    %16 = arith.truncf %15 : vector<128x128xf32> to vector<128x128xbf16>
    %c0_10 = arith.constant 0 : index
    %c0_11 = arith.constant 0 : index
    %17 = vector.load %arg6[%c0_10, %c0_11] : memref<128x128xbf16, #tpu.memory_space<vmem>>, vector<128x128xbf16>
    tpu.vector_store %arg6[%c0_10, %c0_11], %16 {strides = array<i32>} : memref<128x128xbf16, #tpu.memory_space<vmem>>, vector<128x128xbf16>,
    %cst_12 = arith.constant dense<0.000000e+00> : vector<128xf32>
    %18 = vector.multi_reduction <add>, %15, %cst_12 [0] : vector<128x128xf32> to vector<128xf32>
    %19 = vector.shape_cast %18 : vector<128xf32> to vector<1x128xf32>
    %20 = vector.shape_cast %19 : vector<1x128xf32> to vector<1x1x128xf32>
    %c0_13 = arith.constant 0 : index
    %c0_14 = arith.constant 0 : index
    %c0_15 = arith.constant 0 : index
    %21 = vector.load %arg7[%c0_13, %c0_14, %c0_15] : memref<1x1x128xf32, #tpu.memory_space<vmem>>, vector<1x1x128xf32>
    tpu.vector_store %arg7[%c0_13, %c0_14, %c0_15], %20 {strides = array<i32>} : memref<1x1x128xf32, #tpu.memory_space<vmem>>, vector<1x1x128xf32>,
    %22 = arith.mulf %15, %15 : vector<128x128xf32>
    %cst_16 = arith.constant dense<0.000000e+00> : vector<128xf32>
    %23 = vector.multi_reduction <add>, %22, %cst_16 [0] : vector<128x128xf32> to vector<128xf32>
    %24 = vector.shape_cast %23 : vector<128xf32> to vector<1x128xf32>
    %25 = vector.shape_cast %24 : vector<1x128xf32> to vector<1x1x128xf32>
    %c0_17 = arith.constant 0 : index
    %c0_18 = arith.constant 0 : index
    %c0_19 = arith.constant 0 : index
    %26 = vector.load %arg8[%c0_17, %c0_18, %c0_19] : memref<1x1x128xf32, #tpu.memory_space<vmem>>, vector<1x1x128xf32>
    tpu.vector_store %arg8[%c0_17, %c0_18, %c0_19], %25 {strides = array<i32>} : memref<1x1x128xf32, #tpu.memory_space<vmem>>, vector<1x1x128xf32>,
    return
  }
  func.func @transform_0(%arg0: i32) -> (i32, i32) {
    %c0_i32 = arith.constant 0 : i32
    %c0_i32_0 = arith.constant 0 : i32
    return %arg0, %c0_i32 : i32, i32
  }
  func.func @transform_1(%arg0: i32) -> (i32, i32) {
    %c0_i32 = arith.constant 0 : i32
    %c0_i32_0 = arith.constant 0 : i32
    %c0_i32_1 = arith.constant 0 : i32
    return %c0_i32, %c0_i32_0 : i32, i32
  }
  func.func @transform_2(%arg0: i32) -> (i32, i32) {
    %c0_i32 = arith.constant 0 : i32
    %c0_i32_0 = arith.constant 0 : i32
    %c0_i32_1 = arith.constant 0 : i32
    return %c0_i32, %c0_i32_0 : i32, i32
  }
  func.func @transform_3(%arg0: i32) -> (i32, i32) {
    %c0_i32 = arith.constant 0 : i32
    %c0_i32_0 = arith.constant 0 : i32
    %c0_i32_1 = arith.constant 0 : i32
    return %c0_i32, %c0_i32_0 : i32, i32
  }
  func.func @transform_4(%arg0: i32) -> (i32, i32) {
    %c0_i32 = arith.constant 0 : i32
    %c0_i32_0 = arith.constant 0 : i32
    %c0_i32_1 = arith.constant 0 : i32
    return %c0_i32, %c0_i32_0 : i32, i32
  }
  func.func @transform_5(%arg0: i32) -> (i32, i32) {
    %c0_i32 = arith.constant 0 : i32
    %c0_i32_0 = arith.constant 0 : i32
    return %arg0, %c0_i32 : i32, i32
  }
  func.func @transform_6(%arg0: i32) -> (i32, i32, i32) {
    %c0_i32 = arith.constant 0 : i32
    %c0_i32_0 = arith.constant 0 : i32
    %c0_i32_1 = arith.constant 0 : i32
    return %arg0, %c0_i32, %c0_i32_0 : i32, i32, i32
  }
  func.func @transform_7(%arg0: i32) -> (i32, i32, i32) {
    %c0_i32 = arith.constant 0 : i32
    %c0_i32_0 = arith.constant 0 : i32
    %c0_i32_1 = arith.constant 0 : i32
    return %arg0, %c0_i32, %c0_i32_0 : i32, i32, i32
  }
}

module attributes {stable_mosaic.version = 11 : i64} {
  func.func @feat_mix_kernel(%arg0: i32, %arg1: memref<128x128xbf16, #tpu.memory_space<vmem>>, %arg2: memref<1x128xf32, #tpu.memory_space<vmem>>, %arg3: memref<1x128xf32, #tpu.memory_space<vmem>>, %arg4: memref<128x128xbf16, #tpu.memory_space<vmem>>, %arg5: memref<1x128xf32, #tpu.memory_space<vmem>>, %arg6: memref<128x128xbf16, #tpu.memory_space<vmem>>, %arg7: memref<1x128xf32, #tpu.memory_space<vmem>>, %arg8: memref<128x128xf32, #tpu.memory_space<vmem>>) attributes {dimension_semantics = [#tpu.dimension_semantics<parallel>], iteration_bounds = array<i64: 2>, scalar_prefetch = 0 : i64, scratch_operands = 0 : i64, tpu.core_type = #tpu.core_type<tc>, window_params = [{transform_indices = @transform_0, window_bounds = array<i64: 128, 128>}, {pipeline_mode = #tpu.pipeline_mode<synchronous>, transform_indices = @transform_1, window_bounds = array<i64: 1, 128>}, {pipeline_mode = #tpu.pipeline_mode<synchronous>, transform_indices = @transform_2, window_bounds = array<i64: 1, 128>}, {pipeline_mode = #tpu.pipeline_mode<synchronous>, transform_indices = @transform_3, window_bounds = array<i64: 128, 128>}, {pipeline_mode = #tpu.pipeline_mode<synchronous>, transform_indices = @transform_4, window_bounds = array<i64: 1, 128>}, {pipeline_mode = #tpu.pipeline_mode<synchronous>, transform_indices = @transform_5, window_bounds = array<i64: 128, 128>}, {pipeline_mode = #tpu.pipeline_mode<synchronous>, transform_indices = @transform_6, window_bounds = array<i64: 1, 128>}, {transform_indices = @transform_7, window_bounds = array<i64: 128, 128>}]} {
    %c0 = arith.constant 0 : index
    %c0_0 = arith.constant 0 : index
    %0 = vector.load %arg1[%c0, %c0_0] : memref<128x128xbf16, #tpu.memory_space<vmem>>, vector<128x128xbf16>
    %1 = arith.extf %0 : vector<128x128xbf16> to vector<128x128xf32>
    %c0_1 = arith.constant 0 : index
    %c0_2 = arith.constant 0 : index
    %2 = vector.load %arg2[%c0_1, %c0_2] : memref<1x128xf32, #tpu.memory_space<vmem>>, vector<1x128xf32>
    %3 = vector.broadcast %2 : vector<1x128xf32> to vector<128x128xf32>
    %4 = arith.mulf %1, %3 : vector<128x128xf32>
    %c0_3 = arith.constant 0 : index
    %c0_4 = arith.constant 0 : index
    %5 = vector.load %arg3[%c0_3, %c0_4] : memref<1x128xf32, #tpu.memory_space<vmem>>, vector<1x128xf32>
    %6 = vector.broadcast %5 : vector<1x128xf32> to vector<128x128xf32>
    %7 = arith.addf %4, %6 : vector<128x128xf32>
    %8 = arith.truncf %7 : vector<128x128xf32> to vector<128x128xbf16>
    %c0_5 = arith.constant 0 : index
    %c0_6 = arith.constant 0 : index
    %9 = vector.load %arg4[%c0_5, %c0_6] : memref<128x128xbf16, #tpu.memory_space<vmem>>, vector<128x128xbf16>
    %cst = arith.constant dense<0.000000e+00> : vector<128x128xf32>
    %10 = tpu.matmul %8, %9, %cst {dimension_numbers = #tpu.dot_dimension_numbers<[1], [0], [0], [1], [0, 0, 1, 1], [], []>} : vector<128x128xbf16>, vector<128x128xbf16>, vector<128x128xf32> -> vector<128x128xf32>
    %c0_7 = arith.constant 0 : index
    %c0_8 = arith.constant 0 : index
    %11 = vector.load %arg5[%c0_7, %c0_8] : memref<1x128xf32, #tpu.memory_space<vmem>>, vector<1x128xf32>
    %12 = vector.broadcast %11 : vector<1x128xf32> to vector<128x128xf32>
    %13 = arith.addf %10, %12 : vector<128x128xf32>
    %cst_9 = arith.constant 0.000000e+00 : f32
    %14 = vector.broadcast %cst_9 : f32 to vector<128x128xf32>
    %15 = arith.maximumf %13, %14 : vector<128x128xf32>
    %16 = arith.truncf %15 : vector<128x128xf32> to vector<128x128xbf16>
    %c0_10 = arith.constant 0 : index
    %c0_11 = arith.constant 0 : index
    %17 = vector.load %arg6[%c0_10, %c0_11] : memref<128x128xbf16, #tpu.memory_space<vmem>>, vector<128x128xbf16>
    %cst_12 = arith.constant dense<0.000000e+00> : vector<128x128xf32>
    %18 = tpu.matmul %16, %17, %cst_12 {dimension_numbers = #tpu.dot_dimension_numbers<[1], [0], [0], [1], [0, 0, 1, 1], [], []>} : vector<128x128xbf16>, vector<128x128xbf16>, vector<128x128xf32> -> vector<128x128xf32>
    %c0_13 = arith.constant 0 : index
    %c0_14 = arith.constant 0 : index
    %19 = vector.load %arg7[%c0_13, %c0_14] : memref<1x128xf32, #tpu.memory_space<vmem>>, vector<1x128xf32>
    %20 = vector.broadcast %19 : vector<1x128xf32> to vector<128x128xf32>
    %21 = arith.addf %18, %20 : vector<128x128xf32>
    %22 = arith.addf %21, %1 : vector<128x128xf32>
    %c0_15 = arith.constant 0 : index
    %c0_16 = arith.constant 0 : index
    %23 = vector.load %arg8[%c0_15, %c0_16] : memref<128x128xf32, #tpu.memory_space<vmem>>, vector<128x128xf32>
    tpu.vector_store %arg8[%c0_15, %c0_16], %22 {strides = array<i32>} : memref<128x128xf32, #tpu.memory_space<vmem>>, vector<128x128xf32>,
    return
  }
  func.func @transform_0(%arg0: i32) -> (i32, i32) {
    %c0_i32 = arith.constant 0 : i32
    %c0_i32_0 = arith.constant 0 : i32
    return %arg0, %c0_i32 : i32, i32
  }
  func.func @transform_1(%arg0: i32) -> (i32, i32) {
    %c0_i32 = arith.constant 0 : i32
    %c0_i32_0 = arith.constant 0 : i32
    %c0_i32_1 = arith.constant 0 : i32
    return %c0_i32, %c0_i32_0 : i32, i32
  }
  func.func @transform_2(%arg0: i32) -> (i32, i32) {
    %c0_i32 = arith.constant 0 : i32
    %c0_i32_0 = arith.constant 0 : i32
    %c0_i32_1 = arith.constant 0 : i32
    return %c0_i32, %c0_i32_0 : i32, i32
  }
  func.func @transform_3(%arg0: i32) -> (i32, i32) {
    %c0_i32 = arith.constant 0 : i32
    %c0_i32_0 = arith.constant 0 : i32
    %c0_i32_1 = arith.constant 0 : i32
    return %c0_i32, %c0_i32_0 : i32, i32
  }
  func.func @transform_4(%arg0: i32) -> (i32, i32) {
    %c0_i32 = arith.constant 0 : i32
    %c0_i32_0 = arith.constant 0 : i32
    %c0_i32_1 = arith.constant 0 : i32
    return %c0_i32, %c0_i32_0 : i32, i32
  }
  func.func @transform_5(%arg0: i32) -> (i32, i32) {
    %c0_i32 = arith.constant 0 : i32
    %c0_i32_0 = arith.constant 0 : i32
    %c0_i32_1 = arith.constant 0 : i32
    return %c0_i32, %c0_i32_0 : i32, i32
  }
  func.func @transform_6(%arg0: i32) -> (i32, i32) {
    %c0_i32 = arith.constant 0 : i32
    %c0_i32_0 = arith.constant 0 : i32
    %c0_i32_1 = arith.constant 0 : i32
    return %c0_i32, %c0_i32_0 : i32, i32
  }
  func.func @transform_7(%arg0: i32) -> (i32, i32) {
    %c0_i32 = arith.constant 0 : i32
    %c0_i32_0 = arith.constant 0 : i32
    return %arg0, %c0_i32 : i32, i32
  }
}

</mosaic_0001>

<bundles_post_ra>
// kernel: mixer_layer.3
= control target key start
LH: loop header
LB: loop body
LE: loop exit
PB: predicated region body
PF: predicated region fallthrough
CT: control target
= control target key end

     0   :  { %s339_s9 = smov 0   ;;  %s382_s0 = inlined_call_operand.vmem [shape: f32[256,128], index: 0, kind: input, shape index: {}]   ;;  %s383_s1 = inlined_call_operand.vmem [shape: f32[2,1,128], index: 1, kind: output, shape index: {0}]   ;;  %s384_s2 = inlined_call_operand.vmem [shape: f32[2,1,128], index: 2, kind: output, shape index: {1}]  }
   0x1 LB: > { %s345_s10 = sadd.s32 4294967295, %s322_s9   ;;  %p303_p0 = scmp.ge.s32.totalorder %s322_s9, 1  ;;  %s322_s9 = sphi %s339_s9, %s13_s9  }
   0x2   : > { %p116_p1 = scmp.lt.s32.totalorder %s322_s9, 3 }
   0x4   : > { %p117_p2 = pnand %p303_p0, %p116_p1 }
   0x5   : > { %s304_s11 = sshll.u32 (!%p117_p2), %s345_s10, 4  ;;  %p145_p4 = scmp.lt.s32.totalorder (!%p117_p2), %s345_s10, 1 }
   0x6   : > { %120 = sbr.rel (%p117_p2) target bundleno = 60 (0x3c), region = 24  ;;  %p140_p3 = scmp.lt.s32.totalorder (!%p117_p2), %s304_s11, 31 }
   0xb   : > { %s386_s11 = smov (!%p140_p3, %s304_s11), 31  ;;  %s388_s10 = smov (!%p145_p4, %s345_s10), 1 }
   0xc   : > { %s305_s12 = sshll.u32 %s386_s11, 3  ;;  %s147_s18 = scalar_lea.vmem %s383_s1, %s388_s10 }
   0xd   : > { %s353_s15 = scalar_lea.vmem %s382_s0, %s305_s12  ;;  %s150_s21 = scalar_lea.vmem %s384_s2, %s388_s10 }
   0xe   : > { %v151_v0 = vld [vmem:[%s353_s15] sm:$0xff]  ;;  %v152_v1 = vld [vmem:[%s353_s15 + $0x8] sm:$0xff]  ;;  %v153_v2 = vld [vmem:[%s353_s15 + $0x10] sm:$0xff] }
   0xf   : > { %v154_v3 = vld [vmem:[%s353_s15 + $0x18] sm:$0xff]  ;;  %v167_v4 = vadd.f32 %v152_v1, %v151_v0  ;;  %v189_v5 = vmul.f32 %v151_v0, %v151_v0  ;;  %v190_v6 = vmul.f32 %v152_v1, %v152_v1  ;;  %v191_v7 = vmul.f32 %v153_v2, %v153_v2  ;;  %v155_v8 = vld [vmem:[%s353_s15 + $0x20] sm:$0xff]  ;;  %v156_v12 = vld [vmem:[%s353_s15 + $0x28] sm:$0xff] }
  0x10   : > { %v192_v10 = vmul.f32 %v154_v3, %v154_v3  ;;  %v193_v14 = vmul.f32 %v155_v8, %v155_v8  ;;  %v157_v16 = vld [vmem:[%s353_s15 + $0x30] sm:$0xff]  ;;  %v194_v18 = vmul.f32 %v156_v12, %v156_v12  ;;  %v158_v20 = vld [vmem:[%s353_s15 + $0x38] sm:$0xff]  ;;  %v159_v24 = vld [vmem:[%s353_s15 + $0x40] sm:$0xff] }
  0x11   : > { %v168_v9 = vadd.f32 %v167_v4, %v153_v2  ;;  %v205_v11 = vadd.f32 %v190_v6, %v189_v5  ;;  %v195_v22 = vmul.f32 %v157_v16, %v157_v16  ;;  %v196_v26 = vmul.f32 %v158_v20, %v158_v20  ;;  %v160_v28 = vld [vmem:[%s353_s15 + $0x48] sm:$0xff]  ;;  %v161_v32 = vld [vmem:[%s353_s15 + $0x50] sm:$0xff]  ;;  %v162_v36 = vld [vmem:[%s353_s15 + $0x58] sm:$0xff] }
  0x12   : > { %v197_v30 = vmul.f32 %v159_v24, %v159_v24  ;;  %v198_v34 = vmul.f32 %v160_v28, %v160_v28  ;;  %v199_v38 = vmul.f32 %v161_v32, %v161_v32  ;;  %v163_v40 = vld [vmem:[%s353_s15 + $0x60] sm:$0xff]  ;;  %v200_v42 = vmul.f32 %v162_v36, %v162_v36  ;;  %v164_v44 = vld [vmem:[%s353_s15 + $0x68] sm:$0xff]  ;;  %v165_v48 = vld [vmem:[%s353_s15 + $0x70] sm:$0xff] }
  0x13   : > { %v169_v13 = vadd.f32 %v168_v9, %v154_v3  ;;  %v206_v15 = vadd.f32 %v205_v11, %v191_v7  ;;  %v201_v46 = vmul.f32 %v163_v40, %v163_v40  ;;  %v202_v50 = vmul.f32 %v164_v44, %v164_v44  ;;  %v166_v52 = vld [vmem:[%s353_s15 + $0x78] sm:$0xff] }
  0x14   : > { %v203_v54 = vmul.f32 %v165_v48, %v165_v48  ;;  %v204_v57 = vmul.f32 %v166_v52, %v166_v52 }
  0x15   : > { %v170_v17 = vadd.f32 %v169_v13, %v155_v8  ;;  %v207_v19 = vadd.f32 %v206_v15, %v192_v10 }
  0x17   : > { %v171_v21 = vadd.f32 %v170_v17, %v156_v12  ;;  %v208_v23 = vadd.f32 %v207_v19, %v193_v14 }
  0x19   : > { %v172_v25 = vadd.f32 %v171_v21, %v157_v16  ;;  %v209_v27 = vadd.f32 %v208_v23, %v194_v18 }
  0x1b   : > { %v173_v29 = vadd.f32 %v172_v25, %v158_v20  ;;  %v210_v31 = vadd.f32 %v209_v27, %v195_v22 }
  0x1d   : > { %v174_v33 = vadd.f32 %v173_v29, %v159_v24  ;;  %v211_v35 = vadd.f32 %v210_v31, %v196_v26 }
  0x1f   : > { %v175_v37 = vadd.f32 %v174_v33, %v160_v28  ;;  %v212_v39 = vadd.f32 %v211_v35, %v197_v30 }
  0x21   : > { %v176_v41 = vadd.f32 %v175_v37, %v161_v32  ;;  %v213_v43 = vadd.f32 %v212_v39, %v198_v34 }
  0x23   : > { %v177_v45 = vadd.f32 %v176_v41, %v162_v36  ;;  %v214_v47 = vadd.f32 %v213_v43, %v199_v38 }
  0x25   : > { %v178_v49 = vadd.f32 %v177_v45, %v163_v40  ;;  %v215_v51 = vadd.f32 %v214_v47, %v200_v42 }
  0x27   : > { %v179_v53 = vadd.f32 %v178_v49, %v164_v44  ;;  %v216_v55 = vadd.f32 %v215_v51, %v201_v46 }
  0x29   : > { %v180_v56 = vadd.f32 %v179_v53, %v165_v48  ;;  %v217_v58 = vadd.f32 %v216_v55, %v202_v50 }
  0x2b   : > { %v181_v59 = vadd.f32 %v180_v56, %v166_v52  ;;  %v218_v60 = vadd.f32 %v217_v58, %v203_v54 }
  0x2d   : > { %v182_v61 = vrot.slane %v181_v59, 4  ;;  %v219_v62 = vadd.f32 %v218_v60, %v204_v57 }
  0x2f   : > { %v183_v63 = vadd.f32 %v182_v61, %v181_v59  ;;  %v220_v0 = vrot.slane %v219_v62, 4 }
  0x31   : > { %v184_v1 = vrot.slane %v183_v63, 2  ;;  %v221_v2 = vadd.f32 %v220_v0, %v219_v62 }
  0x33   : > { %v185_v3 = vadd.f32 %v184_v1, %v183_v63  ;;  %v222_v4 = vrot.slane %v221_v2, 2 }
  0x35   : > { %v186_v5 = vrot.slane %v185_v3, 1  ;;  %v223_v6 = vadd.f32 %v222_v4, %v221_v2 }
  0x37   : > { %v187_v7 = vadd.f32 %v186_v5, %v185_v3  ;;  %v224_v8 = vrot.slane %v223_v6, 1 }
  0x39   : > { %188 = vst [vmem:[%s147_s18] sm:$0x1] %v187_v7  ;;  %v225_v9 = vadd.f32 %v224_v8, %v223_v6 }
  0x3b   : > { %226 = vst [vmem:[%s150_s21] sm:$0x1] %v225_v9 }
  0x3c PF: > { %s13_s9 = sadd.s32 1, %s322_s9  }
  0x3d   : > { %p10_p5 = scmp.ge.s32.totalorder %s13_s9, 4  }
  0x3f   :  { %12 = sbr.rel (!%p10_p5) target bundleno = 1 (0x1), region = 66 }

// kernel: tile.13
= control target key start
LH: loop header
LB: loop body
LE: loop exit
PB: predicated region body
PF: predicated region fallthrough
CT: control target
= control target key end

     0   :  { %s22_s0 = inlined_call_operand.vmem [shape: f32[16], index: 0, kind: input, shape index: {}]   ;;  %s23_s1 = inlined_call_operand.vmem [shape: f32[8,16], index: 1, kind: output, shape index: {}]  }
   0x1   :  { %v4_v0 = vld [vmem:[%s22_s0] ss:$0 sm:$0xff] }
   0x2   :  { %5 = vst [vmem:[%s23_s1] sm:$0xff] %v4_v0 }

// kernel: mixer_layer.4
= control target key start
LH: loop header
LB: loop body
LE: loop exit
PB: predicated region body
PF: predicated region fallthrough
CT: control target
= control target key end

     0   :  { %s891_s24 = smov 0   ;;  %s1120_s0 = inlined_call_operand.vmem [shape: f32[256,128], index: 0, kind: input, shape index: {}]   ;;  %s1121_s1 = inlined_call_operand.vmem [shape: f32[1,128], index: 1, kind: input, shape index: {}]   ;;  %s1122_s2 = inlined_call_operand.vmem [shape: f32[1,128], index: 2, kind: input, shape index: {}]   ;;  %s1123_s3 = inlined_call_operand.vmem [shape: bf16[128,128], index: 3, kind: input, shape index: {}]   ;;  %s1124_s4 = inlined_call_operand.vmem [shape: f32[1,128], index: 4, kind: input, shape index: {}]   ;;  %s1125_s5 = inlined_call_operand.vmem [shape: bf16[256,128], index: 5, kind: output, shape index: {0}]   ;;  %s1126_s6 = inlined_call_operand.vmem [shape: f32[2,1,128], index: 6, kind: output, shape index: {1}]   ;;  %s1127_s7 = inlined_call_operand.vmem [shape: f32[2,1,128], index: 7, kind: output, shape index: {2}]  }
   0x1 LB: > { %s897_s25 = sadd.s32 4294967295, %s849_s24   ;;  %p714_p0 = scmp.ge.s32.totalorder %s849_s24, 1  ;;  %s849_s24 = sphi %s891_s24, %s18_s24  }
   0x2   : > { %p243_p1 = scmp.lt.s32.totalorder %s849_s24, 3 }
   0x4   : > { %p244_p2 = pnand %p714_p0, %p243_p1 }
   0x5   : > { %s715_s28 = sshll.u32 (!%p244_p2), %s897_s25, 4  ;;  %p293_p4 = scmp.lt.s32.totalorder (!%p244_p2), %s897_s25, 1 }
   0x6   : > { %247 = sbr.rel (%p244_p2) target bundleno = 240 (0xf0), region = 40  ;;  %p282_p3 = scmp.lt.s32.totalorder (!%p244_p2), %s715_s28, 31 }
   0xb   : > { %v760_v0 = vld [vmem:[%s1123_s3 + $0x38] sm:$0xff]  ;;  %v759_v1 = vld [vmem:[%s1123_s3 + $0x30] sm:$0xff]  ;;  %v758_v2 = vld [vmem:[%s1123_s3 + $0x28] sm:$0xff]  ;;  %s1129_s28 = smov (!%p282_p3, %s715_s28), 31  ;;  %s1131_s25 = smov (!%p293_p4, %s897_s25), 1 }
   0xc   : > { %431 = vmatpush.bf16.msra.mxu0 %v760_v0  ;;  %808 = vmatpush.bf16.msra.mxu1 %v760_v0  ;;  %v757_v3 = vld [vmem:[%s1123_s3 + $0x20] sm:$0xff]  ;;  %s716_s12 = sshll.u32 %s1129_s28, 3  ;;  %v756_v4 = vld [vmem:[%s1123_s3 + $0x18] sm:$0xff]  ;;  %v755_v6 = vld [vmem:[%s1123_s3 + $0x10] sm:$0xff]  ;;  %s718_s10 = sshll.u32 %s1129_s28, 2 }
   0xd   : > { %809 = vmatpush.bf16.msra.mxu2 %v760_v0  ;;  %810 = vmatpush.bf16.msra.mxu3 %v760_v0  ;;  %s923_s17 = scalar_lea.vmem %s1120_s0, %s716_s12  ;;  %v928_v5 = vld [vmem:[%s1121_s1] ss:$0 sm:$0xff]  ;;  %v754_v21 = vld [vmem:[%s1123_s3 + $0x8] sm:$0xff]  ;;  %s1045_s13 = scalar_lea.vmem %s1125_s5, %s718_s10 }
   0xe   : > { %v934_v7 = vld [vmem:[%s923_s17] sm:$0xff]  ;;  %v937_v8 = vld [vmem:[%s923_s17 + $0x8] sm:$0xff]  ;;  %v983_v38 = vld [vmem:[%s923_s17 + $0x10] sm:$0xff]  ;;  %s295_s15 = scalar_lea.vmem %s1126_s6, %s1131_s25  ;;  %s298_s18 = scalar_lea.vmem %s1127_s7, %s1131_s25 }
   0xf   : > { %v940_v9 = vld [vmem:[%s923_s17 + $0x20] sm:$0xff]  ;;  %v943_v10 = vld [vmem:[%s923_s17 + $0x28] sm:$0xff]  ;;  %v319_v15 = vmul.f32 %v928_v5, %v934_v7  ;;  %v320_v17 = vmul.f32 %v928_v5, %v937_v8  ;;  %v986_v39 = vld [vmem:[%s923_s17 + $0x18] sm:$0xff]  ;;  %v321_v46 = vmul.f32 %v928_v5, %v983_v38 }
  0x10   : > { %432 = vmatpush.bf16.msra.mxu0 %v759_v1  ;;  %811 = vmatpush.bf16.msra.mxu1 %v759_v1  ;;  %v946_v11 = vld [vmem:[%s923_s17 + $0x40] sm:$0xff]  ;;  %v949_v12 = vld [vmem:[%s923_s17 + $0x48] sm:$0xff]  ;;  %v323_v18 = vmul.f32 %v928_v5, %v940_v9  ;;  %v324_v19 = vmul.f32 %v928_v5, %v943_v10  ;;  %v989_v40 = vld [vmem:[%s923_s17 + $0x30] sm:$0xff]  ;;  %v322_v47 = vmul.f32 %v928_v5, %v986_v39 }
  0x11   : > { %812 = vmatpush.bf16.msra.mxu2 %v759_v1  ;;  %813 = vmatpush.bf16.msra.mxu3 %v759_v1  ;;  %v952_v13 = vld [vmem:[%s923_s17 + $0x60] sm:$0xff]  ;;  %v955_v14 = vld [vmem:[%s923_s17 + $0x68] sm:$0xff]  ;;  %v327_v20 = vmul.f32 %v928_v5, %v946_v11  ;;  %v328_v22 = vmul.f32 %v928_v5, %v949_v12  ;;  %v992_v41 = vld [vmem:[%s923_s17 + $0x38] sm:$0xff]  ;;  %v325_v48 = vmul.f32 %v928_v5, %v989_v40 }
  0x12   : > { %v841_v16 = vld [vmem:[%s1122_s2] ss:$0 sm:$0xff]  ;;  %v331_v23 = vmul.f32 %v928_v5, %v952_v13  ;;  %v332_v24 = vmul.f32 %v928_v5, %v955_v14  ;;  %v995_v42 = vld [vmem:[%s923_s17 + $0x50] sm:$0xff]  ;;  %v998_v43 = vld [vmem:[%s923_s17 + $0x58] sm:$0xff]  ;;  %v326_v49 = vmul.f32 %v928_v5, %v992_v41 }
  0x13   : > { %v339_v25 = vadd.f32 %v841_v16, %v319_v15  ;;  %v340_v26 = vadd.f32 %v841_v16, %v320_v17  ;;  %v343_v27 = vadd.f32 %v841_v16, %v323_v18  ;;  %v344_v28 = vadd.f32 %v841_v16, %v324_v19  ;;  %v753_v30 = vld [vmem:[%s1123_s3] sm:$0xff]  ;;  %v1001_v44 = vld [vmem:[%s923_s17 + $0x70] sm:$0xff]  ;;  %v1004_v45 = vld [vmem:[%s923_s17 + $0x78] sm:$0xff] }
  0x14   : > { %433 = vmatpush.bf16.msra.mxu0 %v758_v2  ;;  %814 = vmatpush.bf16.msra.mxu1 %v758_v2  ;;  %v347_v29 = vadd.f32 %v841_v16, %v327_v20  ;;  %v348_v31 = vadd.f32 %v841_v16, %v328_v22  ;;  %v351_v32 = vadd.f32 %v841_v16, %v331_v23 }
  0x15   : > { %815 = vmatpush.bf16.msra.mxu2 %v758_v2  ;;  %816 = vmatpush.bf16.msra.mxu3 %v758_v2  ;;  %v352_v33 = vadd.f32 %v841_v16, %v332_v24  ;;  %v355_v34 = vpack.c.bf16 %v340_v26, %v339_v25  ;;  %v357_v35 = vpack.c.bf16 %v344_v28, %v343_v27 }
  0x16   : > { %v359_v36 = vpack.c.bf16 %v348_v31, %v347_v29  ;;  %v329_v50 = vmul.f32 %v928_v5, %v995_v42  ;;  %v330_v51 = vmul.f32 %v928_v5, %v998_v43  ;;  %v333_v52 = vmul.f32 %v928_v5, %v1001_v44 }
  0x17   : > { %v361_v37 = vpack.c.bf16 %v352_v33, %v351_v32  ;;  %v334_v53 = vmul.f32 %v928_v5, %v1004_v45  ;;  %v341_v54 = vadd.f32 %v841_v16, %v321_v46  ;;  %v342_v55 = vadd.f32 %v841_v16, %v322_v47 }
  0x18   : > { %434 = vmatpush.bf16.msra.mxu0 %v757_v3  ;;  %817 = vmatpush.bf16.msra.mxu1 %v757_v3  ;;  %v345_v56 = vadd.f32 %v841_v16, %v325_v48  ;;  %v346_v57 = vadd.f32 %v841_v16, %v326_v49  ;;  %v349_v58 = vadd.f32 %v841_v16, %v329_v50 }
  0x19   : > { %818 = vmatpush.bf16.msra.mxu2 %v757_v3  ;;  %819 = vmatpush.bf16.msra.mxu3 %v757_v3  ;;  %v350_v59 = vadd.f32 %v841_v16, %v330_v51  ;;  %v353_v60 = vadd.f32 %v841_v16, %v333_v52  ;;  %v354_v61 = vadd.f32 %v841_v16, %v334_v53 }
  0x1a   : > { %v356_v62 = vpack.c.bf16 %v342_v55, %v341_v54  ;;  %v358_v63 = vpack.c.bf16 %v346_v57, %v345_v56 }
  0x1b   : > { %v360_v0 = vpack.c.bf16 %v350_v59, %v349_v58  ;;  %v362_v1 = vpack.c.bf16 %v354_v61, %v353_v60 }
  0x1c   : > { %435 = vmatpush.bf16.msra.mxu0 %v756_v4  ;;  %820 = vmatpush.bf16.msra.mxu1 %v756_v4 }
  0x1d   : > { %821 = vmatpush.bf16.msra.mxu2 %v756_v4  ;;  %822 = vmatpush.bf16.msra.mxu3 %v756_v4  ;;  %v1025_v4 = vld [vmem:[%s1124_s4] ss:$0 sm:$0xff] }
  0x20   : > { %436 = vmatpush.bf16.msra.mxu0 %v755_v6  ;;  %823 = vmatpush.bf16.msra.mxu1 %v755_v6 }
  0x21   : > { %824 = vmatpush.bf16.msra.mxu2 %v755_v6  ;;  %825 = vmatpush.bf16.msra.mxu3 %v755_v6 }
  0x24   : > { %437 = vmatpush.bf16.msra.mxu0 %v754_v21  ;;  %826 = vmatpush.bf16.msra.mxu1 %v754_v21 }
  0x25   : > { %827 = vmatpush.bf16.msra.mxu2 %v754_v21  ;;  %828 = vmatpush.bf16.msra.mxu3 %v754_v21 }
  0x28   : > { %438 = vmatpush.bf16.msra.mxu0 %v753_v30  ;;  %829 = vmatpush.bf16.msra.mxu1 %v753_v30 }
  0x29   : > { %830 = vmatpush.bf16.msra.mxu2 %v753_v30  ;;  %831 = vmatpush.bf16.msra.mxu3 %v753_v30 }
  0x2b   : > { %439 = vmatmul.bf16.vlgmr.msra.gmra.mxu0 %v355_v34  ;;  %449 = vmatmul.bf16.vlgmr.msra.gmra.mxu1 %v357_v35 }
  0x2c   : > { %459 = vmatmul.bf16.vlgmr.msra.gmra.mxu2 %v359_v36  ;;  %469 = vmatmul.bf16.vlgmr.msra.gmra.mxu3 %v361_v37 }
  0x3b   : > { %444 = vmatmul.bf16.gmra.mxu0 %v356_v62  ;;  %454 = vmatmul.bf16.gmra.mxu1 %v358_v63 }
  0x3c   : > { %464 = vmatmul.bf16.gmra.mxu2 %v360_v0  ;;  %474 = vmatmul.bf16.gmra.mxu3 %v362_v1 }
  0xa8   : > { %v440_v2 = vpop.f32.mrf.mxu0  ;;  %v450_v3 = vpop.f32.mrf.mxu1 }
  0xa9   : > { %v451_v5 = vadd.f32 %v1025_v4, %v450_v3  ;;  %v441_v6 = vadd.f32 %v1025_v4, %v440_v2 }
  0xab   : > { %v484_v15 = vmax.f32 %v451_v5, 0.0  ;;  %v480_v20 = vmax.f32 %v441_v6, 0.0 }
  0xad   : > { %v1034_v25 = vadd.f32 %v484_v15, %v940_v9  ;;  %v496_v28 = vadd.f32 %v480_v20, %v934_v7 }
  0xaf   : > { %v460_v16 = vpop.f32.mrf.mxu2  ;;  %v470_v17 = vpop.f32.mrf.mxu3  ;;  %v566_v61 = vmul.f32 %v496_v28, %v496_v28 }
  0xb0   : > { %v442_v18 = vpop.f32.mrf.mxu0  ;;  %v452_v19 = vpop.f32.mrf.mxu1  ;;  %v461_v23 = vadd.f32 %v1025_v4, %v460_v16  ;;  %v471_v24 = vadd.f32 %v1025_v4, %v470_v17 }
  0xb1   : > { %v443_v21 = vadd.f32 %v1025_v4, %v442_v18  ;;  %v453_v22 = vadd.f32 %v1025_v4, %v452_v19 }
  0xb2   : > { %v488_v31 = vmax.f32 %v461_v23, 0.0  ;;  %v492_v9 = vmax.f32 %v471_v24, 0.0 }
  0xb3   : > { %v481_v26 = vmax.f32 %v443_v21, 0.0  ;;  %v485_v27 = vmax.f32 %v453_v22, 0.0 }
  0xb4   : > { %v1055_v46 = vadd.f32 %v488_v31, %v946_v11  ;;  %v1058_v48 = vadd.f32 %v492_v9, %v952_v13 }
  0xb5   : > { %v497_v29 = vadd.f32 %v481_v26, %v937_v8  ;;  %v1040_v30 = vadd.f32 %v485_v27, %v943_v10 }
  0xb7   : > { %v764_v32 = vpack.c.bf16 %v497_v29, %v496_v28  ;;  %v774_v33 = vpack.c.bf16 %v1040_v30, %v1034_v25  ;;  %v462_v34 = vpop.f32.mrf.mxu2  ;;  %v472_v7 = vpop.f32.mrf.mxu3  ;;  %v567_v58 = vmul.f32 %v497_v29, %v497_v29  ;;  %v544_v0 = vadd.f32 %v497_v29, %v496_v28 }
  0xb8   : > { %v445_v35 = vpop.f32.mrf.mxu0  ;;  %v455_v8 = vpop.f32.mrf.mxu1  ;;  %v463_v10 = vadd.f32 %v1025_v4, %v462_v34  ;;  %v473_v36 = vadd.f32 %v1025_v4, %v472_v7  ;;  %v570_v28 = vmul.f32 %v1034_v25, %v1034_v25 }
  0xb9   : > { %765 = vst [vmem:[%s1045_s13] sm:$0xff] %v764_v32   ;;  %v446_v37 = vadd.f32 %v1025_v4, %v445_v35  ;;  %v456_v51 = vadd.f32 %v1025_v4, %v455_v8  ;;  %v582_v5 = vadd.f32 %v567_v58, %v566_v61  ;;  %v578_v58 = vmul.f32 %v1058_v48, %v1058_v48 }
  0xba   : > { %802 = vst [vmem:[%s1045_s13 + $0x10] sm:$0xff] %v774_v33   ;;  %v489_v47 = vmax.f32 %v463_v10, 0.0  ;;  %v493_v49 = vmax.f32 %v473_v36, 0.0  ;;  %v571_v33 = vmul.f32 %v1040_v30, %v1040_v30 }
  0xbb   : > { %v482_v50 = vmax.f32 %v446_v37, 0.0  ;;  %v486_v55 = vmax.f32 %v456_v51, 0.0 }
  0xbc   : > { %v1062_v52 = vadd.f32 %v489_v47, %v949_v12  ;;  %v1065_v53 = vadd.f32 %v493_v49, %v955_v14  ;;  %v574_v49 = vmul.f32 %v1055_v46, %v1055_v46 }
  0xbd   : > { %v498_v54 = vadd.f32 %v482_v50, %v983_v38  ;;  %v502_v1 = vadd.f32 %v486_v55, %v989_v40 }
  0xbe   : > { %v784_v11 = vpack.c.bf16 %v1062_v52, %v1055_v46  ;;  %v794_v13 = vpack.c.bf16 %v1065_v53, %v1058_v48 }
  0xbf   : > { %v465_v56 = vpop.f32.mrf.mxu2  ;;  %v475_v57 = vpop.f32.mrf.mxu3  ;;  %v568_v38 = vmul.f32 %v498_v54, %v498_v54  ;;  %v545_v6 = vadd.f32 %v544_v0, %v498_v54  ;;  %v572_v35 = vmul.f32 %v502_v1, %v502_v1 }
  0xc0   : > { %804 = vst [vmem:[%s1045_s13 + $0x20] sm:$0xff] %v784_v11   ;;  %v447_v59 = vpop.f32.mrf.mxu0  ;;  %v457_v60 = vpop.f32.mrf.mxu1  ;;  %v466_v62 = vadd.f32 %v1025_v4, %v465_v56  ;;  %v476_v63 = vadd.f32 %v1025_v4, %v475_v57 }
  0xc1   : > { %v448_v12 = vadd.f32 %v1025_v4, %v447_v59  ;;  %v458_v14 = vadd.f32 %v1025_v4, %v457_v60  ;;  %806 = vst [vmem:[%s1045_s13 + $0x30] sm:$0xff] %v794_v13   ;;  %v583_v17 = vadd.f32 %v582_v5, %v568_v38  ;;  %v579_v60 = vmul.f32 %v1065_v53, %v1065_v53 }
  0xc2   : > { %v490_v18 = vmax.f32 %v466_v62, 0.0  ;;  %v494_v19 = vmax.f32 %v476_v63, 0.0 }
  0xc3   : > { %v483_v2 = vmax.f32 %v448_v12, 0.0  ;;  %v487_v3 = vmax.f32 %v458_v14, 0.0 }
  0xc4   : > { %v506_v29 = vadd.f32 %v490_v18, %v995_v42  ;;  %v510_v9 = vadd.f32 %v494_v19, %v1001_v44 }
  0xc5   : > { %v499_v15 = vadd.f32 %v483_v2, %v986_v39  ;;  %v503_v16 = vadd.f32 %v487_v3, %v992_v41 }
  0xc6   : > { %v576_v11 = vmul.f32 %v506_v29, %v506_v29  ;;  %v580_v61 = vmul.f32 %v510_v9, %v510_v9 }
  0xc7   : > { %v769_v20 = vpack.c.bf16 %v499_v15, %v498_v54  ;;  %v546_v21 = vadd.f32 %v545_v6, %v499_v15  ;;  %v569_v22 = vmul.f32 %v499_v15, %v499_v15  ;;  %v779_v23 = vpack.c.bf16 %v503_v16, %v502_v1  ;;  %v467_v24 = vpop.f32.mrf.mxu2  ;;  %v477_v26 = vpop.f32.mrf.mxu3 }
  0xc8   : > { %v468_v40 = vadd.f32 %v1025_v4, %v467_v24  ;;  %v478_v27 = vadd.f32 %v1025_v4, %v477_v26  ;;  %v573_v47 = vmul.f32 %v503_v16, %v503_v16 }
  0xc9   : > { %801 = vst [vmem:[%s1045_s13 + $0x8] sm:$0xff] %v769_v20   ;;  %v547_v39 = vadd.f32 %v546_v21, %v1034_v25  ;;  %v584_v41 = vadd.f32 %v583_v17, %v569_v22 }
  0xca   : > { %803 = vst [vmem:[%s1045_s13 + $0x18] sm:$0xff] %v779_v23   ;;  %v491_v31 = vmax.f32 %v468_v40, 0.0  ;;  %v495_v32 = vmax.f32 %v478_v27, 0.0 }
  0xcb   : > { %v585_v34 = vadd.f32 %v584_v41, %v570_v28  ;;  %v548_v4 = vadd.f32 %v547_v39, %v1040_v30 }
  0xcc   : > { %v507_v7 = vadd.f32 %v491_v31, %v998_v43  ;;  %v511_v25 = vadd.f32 %v495_v32, %v1004_v45  ;;  %v575_v43 = vmul.f32 %v1062_v52, %v1062_v52 }
  0xcd   : > { %v549_v8 = vadd.f32 %v548_v4, %v502_v1  ;;  %v586_v10 = vadd.f32 %v585_v34, %v571_v33 }
  0xce   : > { %v789_v42 = vpack.c.bf16 %v507_v7, %v506_v29  ;;  %v799_v36 = vpack.c.bf16 %v511_v25, %v510_v9  ;;  %v577_v57 = vmul.f32 %v507_v7, %v507_v7  ;;  %v581_v0 = vmul.f32 %v511_v25, %v511_v25 }
  0xcf   : > { %v550_v37 = vadd.f32 %v549_v8, %v503_v16  ;;  %v587_v44 = vadd.f32 %v586_v10, %v572_v35 }
  0xd0   : > { %805 = vst [vmem:[%s1045_s13 + $0x28] sm:$0xff] %v789_v42  }
  0xd1   : > { %v551_v50 = vadd.f32 %v550_v37, %v1055_v46  ;;  %v588_v51 = vadd.f32 %v587_v44, %v573_v47  ;;  %807 = vst [vmem:[%s1045_s13 + $0x38] sm:$0xff] %v799_v36  }
  0xd3   : > { %v589_v45 = vadd.f32 %v588_v51, %v574_v49  ;;  %v552_v30 = vadd.f32 %v551_v50, %v1062_v52 }
  0xd5   : > { %v553_v54 = vadd.f32 %v552_v30, %v506_v29  ;;  %v590_v13 = vadd.f32 %v589_v45, %v575_v43 }
  0xd7   : > { %v591_v55 = vadd.f32 %v590_v13, %v576_v11  ;;  %v554_v56 = vadd.f32 %v553_v54, %v507_v7 }
  0xd9   : > { %v555_v46 = vadd.f32 %v554_v56, %v1058_v48  ;;  %v592_v59 = vadd.f32 %v591_v55, %v577_v57 }
  0xdb   : > { %v593_v12 = vadd.f32 %v592_v59, %v578_v58  ;;  %v556_v52 = vadd.f32 %v555_v46, %v1065_v53 }
  0xdd   : > { %v557_v14 = vadd.f32 %v556_v52, %v510_v9  ;;  %v594_v38 = vadd.f32 %v593_v12, %v579_v60 }
  0xdf   : > { %v595_v62 = vadd.f32 %v594_v38, %v580_v61  ;;  %v558_v63 = vadd.f32 %v557_v14, %v511_v25 }
  0xe1   : > { %v559_v1 = vrot.slane %v558_v63, 4  ;;  %v596_v2 = vadd.f32 %v595_v62, %v581_v0 }
  0xe3   : > { %v560_v3 = vadd.f32 %v559_v1, %v558_v63  ;;  %v597_v5 = vrot.slane %v596_v2, 4 }
  0xe5   : > { %v561_v48 = vrot.slane %v560_v3, 2  ;;  %v598_v6 = vadd.f32 %v597_v5, %v596_v2 }
  0xe7   : > { %v562_v15 = vadd.f32 %v561_v48, %v560_v3  ;;  %v599_v16 = vrot.slane %v598_v6, 2 }
  0xe9   : > { %v563_v17 = vrot.slane %v562_v15, 1  ;;  %v600_v18 = vadd.f32 %v599_v16, %v598_v6 }
  0xeb   : > { %v564_v53 = vadd.f32 %v563_v17, %v562_v15  ;;  %v601_v19 = vrot.slane %v600_v18, 1 }
  0xed   : > { %565 = vst [vmem:[%s295_s15] sm:$0x1] %v564_v53  ;;  %v602_v20 = vadd.f32 %v601_v19, %v600_v18 }
  0xef   : > { %603 = vst [vmem:[%s298_s18] sm:$0x1] %v602_v20 }
  0xf0 PF: > { %s18_s24 = sadd.s32 1, %s849_s24  }
  0xf1   : > { %p15_p5 = scmp.ge.s32.totalorder %s18_s24, 4  }
  0xf3   :  { %17 = sbr.rel (!%p15_p5) target bundleno = 1 (0x1), region = 94 }

// kernel: mixer_layer.5
= control target key start
LH: loop header
LB: loop body
LE: loop exit
PB: predicated region body
PF: predicated region fallthrough
CT: control target
= control target key end

     0   :  { %s914_s24 = smov 0   ;;  %s1173_s0 = inlined_call_operand.vmem [shape: bf16[256,128], index: 0, kind: input, shape index: {}]   ;;  %s1174_s1 = inlined_call_operand.vmem [shape: f32[1,128], index: 1, kind: input, shape index: {}]   ;;  %s1175_s2 = inlined_call_operand.vmem [shape: f32[1,128], index: 2, kind: input, shape index: {}]   ;;  %s1176_s3 = inlined_call_operand.vmem [shape: bf16[128,128], index: 3, kind: input, shape index: {}]   ;;  %s1177_s4 = inlined_call_operand.vmem [shape: f32[1,128], index: 4, kind: input, shape index: {}]   ;;  %s1178_s5 = inlined_call_operand.vmem [shape: bf16[128,128], index: 5, kind: input, shape index: {}]   ;;  %s1179_s6 = inlined_call_operand.vmem [shape: f32[1,128], index: 6, kind: input, shape index: {}]   ;;  %s1180_s7 = inlined_call_operand.vmem [shape: f32[256,128], index: 7, kind: output, shape index: {}]  }
   0x1 LB: > { %s708_s25 = sadd.s32 4294967295, %s872_s24   ;;  %p712_p0 = scmp.ge.s32.totalorder %s872_s24, 1  ;;  %s872_s24 = sphi %s914_s24, %s17_s24  }
   0x2   : > { %p238_p1 = scmp.lt.s32.totalorder %s872_s24, 3 }
   0x4   : > { %p239_p2 = pnand %p712_p0, %p238_p1 }
   0x5   : > { %s713_s28 = sshll.u32 (!%p239_p2), %s708_s25, 4 }
   0x6   : > { %242 = sbr.rel (%p239_p2) target bundleno = 382 (0x17e), region = 48  ;;  %p271_p3 = scmp.lt.s32.totalorder (!%p239_p2), %s713_s28, 31 }
   0xb   : > { %v790_v0 = vld [vmem:[%s1176_s3 + $0x38] sm:$0xff]  ;;  %v789_v1 = vld [vmem:[%s1176_s3 + $0x30] sm:$0xff]  ;;  %s1182_s28 = smov (!%p271_p3, %s713_s28), 31  ;;  %v788_v2 = vld [vmem:[%s1176_s3 + $0x28] sm:$0xff] }
   0xc   : > { %430 = vmatpush.bf16.msra.mxu0 %v790_v0  ;;  %838 = vmatpush.bf16.msra.mxu2 %v790_v0  ;;  %s714_s10 = sshll.u32 %s1182_s28, 2  ;;  %v787_v3 = vld [vmem:[%s1176_s3 + $0x20] sm:$0xff]  ;;  %v786_v4 = vld [vmem:[%s1176_s3 + $0x18] sm:$0xff]  ;;  %v785_v12 = vld [vmem:[%s1176_s3 + $0x10] sm:$0xff]  ;;  %s716_s29 = sshll.u32 %s1182_s28, 3 }
   0xd   : > { %s940_s15 = scalar_lea.vmem %s1173_s0, %s714_s10  ;;  %v956_v9 = vld [vmem:[%s1174_s1] ss:$0 sm:$0xff]  ;;  %v784_v18 = vld [vmem:[%s1176_s3 + $0x8] sm:$0xff]  ;;  %v798_v48 = vld [vmem:[%s1178_s5 + $0x38] sm:$0xff]  ;;  %s1105_s9 = scalar_lea.vmem %s1180_s7, %s716_s29 }
   0xe   : > { %v946_v5 = vld [vmem:[%s940_s15] sm:$0xff]   ;;  %v991_v26 = vld [vmem:[%s940_s15 + $0x8] sm:$0xff]   ;;  %v1017_v42 = vld [vmem:[%s940_s15 + $0x10] sm:$0xff]   ;;  %571 = vmatpush.bf16.msra.mxu1 %v798_v48  ;;  %846 = vmatpush.bf16.msra.mxu3 %v798_v48 }
   0xf   : > { %v949_v6 = vld [vmem:[%s940_s15 + $0x20] sm:$0xff]   ;;  %v801_v7 = vunpack.c.l.bf16 %v946_v5  ;;  %v802_v8 = vunpack.c.h.bf16 %v946_v5  ;;  %v994_v27 = vld [vmem:[%s940_s15 + $0x28] sm:$0xff]   ;;  %v805_v28 = vunpack.c.l.bf16 %v991_v26  ;;  %v806_v29 = vunpack.c.h.bf16 %v991_v26  ;;  %v1020_v43 = vld [vmem:[%s940_s15 + $0x30] sm:$0xff]  }
  0x10   : > { %431 = vmatpush.bf16.msra.mxu0 %v789_v1  ;;  %839 = vmatpush.bf16.msra.mxu2 %v789_v1  ;;  %v817_v10 = vunpack.c.l.bf16 %v949_v6  ;;  %v818_v11 = vunpack.c.h.bf16 %v949_v6  ;;  %v972_v15 = vld [vmem:[%s1175_s2] ss:$0 sm:$0xff]  ;;  %v821_v30 = vunpack.c.l.bf16 %v994_v27  ;;  %v822_v31 = vunpack.c.h.bf16 %v994_v27  ;;  %v797_v49 = vld [vmem:[%s1178_s5 + $0x30] sm:$0xff]  ;;  %v796_v54 = vld [vmem:[%s1178_s5 + $0x28] sm:$0xff] }
  0x11   : > { %v318_v13 = vmul.f32 %v956_v9, %v801_v7  ;;  %v319_v14 = vmul.f32 %v956_v9, %v802_v8  ;;  %v783_v23 = vld [vmem:[%s1176_s3] sm:$0xff]  ;;  %v320_v32 = vmul.f32 %v956_v9, %v805_v28  ;;  %v321_v33 = vmul.f32 %v956_v9, %v806_v29  ;;  %v1055_v62 = vld [vmem:[%s940_s15 + $0x18] sm:$0xff]  }
  0x12   : > { %v326_v16 = vmul.f32 %v956_v9, %v817_v10  ;;  %v327_v17 = vmul.f32 %v956_v9, %v818_v11  ;;  %v328_v34 = vmul.f32 %v956_v9, %v821_v30  ;;  %v329_v35 = vmul.f32 %v956_v9, %v822_v31  ;;  %572 = vmatpush.bf16.msra.mxu1 %v797_v49  ;;  %v795_v59 = vld [vmem:[%s1178_s5 + $0x20] sm:$0xff]  ;;  %v1058_v63 = vld [vmem:[%s940_s15 + $0x38] sm:$0xff]  }
  0x13   : > { %v338_v19 = vadd.f32 %v972_v15, %v318_v13  ;;  %v339_v20 = vadd.f32 %v972_v15, %v319_v14  ;;  %v340_v36 = vadd.f32 %v972_v15, %v320_v32  ;;  %v341_v37 = vadd.f32 %v972_v15, %v321_v33  ;;  %847 = vmatpush.bf16.msra.mxu3 %v797_v49 }
  0x14   : > { %432 = vmatpush.bf16.msra.mxu0 %v788_v2  ;;  %840 = vmatpush.bf16.msra.mxu2 %v788_v2  ;;  %v346_v21 = vadd.f32 %v972_v15, %v326_v16  ;;  %v347_v22 = vadd.f32 %v972_v15, %v327_v17  ;;  %v348_v38 = vadd.f32 %v972_v15, %v328_v34  ;;  %v809_v44 = vunpack.c.l.bf16 %v1017_v42 }
  0x15   : > { %v354_v24 = vpack.c.bf16 %v339_v20, %v338_v19  ;;  %v349_v39 = vadd.f32 %v972_v15, %v329_v35  ;;  %v355_v40 = vpack.c.bf16 %v341_v37, %v340_v36  ;;  %v810_v45 = vunpack.c.h.bf16 %v1017_v42 }
  0x16   : > { %v358_v25 = vpack.c.bf16 %v347_v22, %v346_v21  ;;  %v825_v46 = vunpack.c.l.bf16 %v1020_v43  ;;  %v826_v47 = vunpack.c.h.bf16 %v1020_v43  ;;  %v322_v50 = vmul.f32 %v956_v9, %v809_v44  ;;  %573 = vmatpush.bf16.msra.mxu1 %v796_v54  ;;  %v794_v22 = vld [vmem:[%s1178_s5 + $0x18] sm:$0xff] }
  0x17   : > { %v359_v41 = vpack.c.bf16 %v349_v39, %v348_v38  ;;  %v323_v51 = vmul.f32 %v956_v9, %v810_v45  ;;  %848 = vmatpush.bf16.msra.mxu3 %v796_v54  ;;  %v813_v0 = vunpack.c.l.bf16 %v1055_v62  ;;  %v814_v1 = vunpack.c.h.bf16 %v1055_v62 }
  0x18   : > { %433 = vmatpush.bf16.msra.mxu0 %v787_v3  ;;  %841 = vmatpush.bf16.msra.mxu2 %v787_v3  ;;  %v330_v52 = vmul.f32 %v956_v9, %v825_v46  ;;  %v331_v53 = vmul.f32 %v956_v9, %v826_v47  ;;  %v342_v55 = vadd.f32 %v972_v15, %v322_v50  ;;  %v829_v2 = vunpack.c.l.bf16 %v1058_v63 }
  0x19   : > { %v343_v56 = vadd.f32 %v972_v15, %v323_v51  ;;  %v830_v3 = vunpack.c.h.bf16 %v1058_v63 }
  0x1a   : > { %v350_v57 = vadd.f32 %v972_v15, %v330_v52  ;;  %v351_v58 = vadd.f32 %v972_v15, %v331_v53  ;;  %574 = vmatpush.bf16.msra.mxu1 %v795_v59  ;;  %v332_v13 = vmul.f32 %v956_v9, %v829_v2 }
  0x1b   : > { %v356_v60 = vpack.c.bf16 %v343_v56, %v342_v55  ;;  %849 = vmatpush.bf16.msra.mxu3 %v795_v59  ;;  %v333_v14 = vmul.f32 %v956_v9, %v830_v3 }
  0x1c   : > { %434 = vmatpush.bf16.msra.mxu0 %v786_v4  ;;  %842 = vmatpush.bf16.msra.mxu2 %v786_v4  ;;  %v360_v61 = vpack.c.bf16 %v351_v58, %v350_v57  ;;  %v324_v4 = vmul.f32 %v956_v9, %v813_v0 }
  0x1d   : > { %v353_v19 = vadd.f32 %v972_v15, %v333_v14 }
  0x1e   : > { %v344_v16 = vadd.f32 %v972_v15, %v324_v4  ;;  %575 = vmatpush.bf16.msra.mxu1 %v794_v22 }
  0x1f   : > { %850 = vmatpush.bf16.msra.mxu3 %v794_v22 }
  0x20   : > { %435 = vmatpush.bf16.msra.mxu0 %v785_v12  ;;  %843 = vmatpush.bf16.msra.mxu2 %v785_v12  ;;  %v325_v12 = vmul.f32 %v956_v9, %v814_v1  ;;  %v793_v9 = vld [vmem:[%s1178_s5 + $0x10] sm:$0xff] }
  0x22   : > { %v345_v17 = vadd.f32 %v972_v15, %v325_v12  ;;  %576 = vmatpush.bf16.msra.mxu1 %v793_v9 }
  0x23   : > { %851 = vmatpush.bf16.msra.mxu3 %v793_v9 }
  0x24   : > { %436 = vmatpush.bf16.msra.mxu0 %v784_v18  ;;  %844 = vmatpush.bf16.msra.mxu2 %v784_v18  ;;  %v352_v18 = vadd.f32 %v972_v15, %v332_v13  ;;  %v357_v20 = vpack.c.bf16 %v345_v17, %v344_v16  ;;  %v792_v15 = vld [vmem:[%s1178_s5 + $0x8] sm:$0xff] }
  0x26   : > { %v361_v21 = vpack.c.bf16 %v353_v19, %v352_v18  ;;  %577 = vmatpush.bf16.msra.mxu1 %v792_v15 }
  0x27   : > { %852 = vmatpush.bf16.msra.mxu3 %v792_v15 }
  0x28   : > { %437 = vmatpush.bf16.msra.mxu0 %v783_v23  ;;  %845 = vmatpush.bf16.msra.mxu2 %v783_v23  ;;  %v791_v23 = vld [vmem:[%s1178_s5] sm:$0xff] }
  0x2a   : > { %578 = vmatpush.bf16.msra.mxu1 %v791_v23 }
  0x2b   : > { %438 = vmatmul.bf16.vlgmr.msra.gmra.mxu0 %v354_v24  ;;  %458 = vmatmul.bf16.vlgmr.msra.gmra.mxu2 %v358_v25  ;;  %v864_v25 = vld [vmem:[%s1177_s4] ss:$0 sm:$0xff] }
  0x2c   : > { %853 = vmatpush.bf16.msra.mxu3 %v791_v23 }
  0x3b   : > { %443 = vmatmul.bf16.gmra.mxu0 %v355_v40  ;;  %463 = vmatmul.bf16.gmra.mxu2 %v359_v41 }
  0x4b   : > { %448 = vmatmul.bf16.gmra.mxu0 %v356_v60  ;;  %468 = vmatmul.bf16.gmra.mxu2 %v360_v61 }
  0x5b   : > { %453 = vmatmul.bf16.gmra.mxu0 %v357_v20  ;;  %473 = vmatmul.bf16.gmra.mxu2 %v361_v21 }
  0xa8   : > { %v439_v24 = vpop.f32.mrf.mxu0 }
  0xa9   : > { %v440_v32 = vadd.f32 %v864_v25, %v439_v24 }
  0xab   : > { %v479_v35 = vmax.f32 %v440_v32, 0.0 }
  0xae   : > { %v459_v33 = vpop.f32.mrf.mxu2 }
  0xaf   : > { %v460_v38 = vadd.f32 %v864_v25, %v459_v33 }
  0xb0   : > { %v441_v34 = vpop.f32.mrf.mxu0 }
  0xb1   : > { %v442_v36 = vadd.f32 %v864_v25, %v441_v34  ;;  %v487_v49 = vmax.f32 %v460_v38, 0.0 }
  0xb3   : > { %v480_v37 = vmax.f32 %v442_v36, 0.0 }
  0xb5   : > { %v495_v39 = vpack.c.bf16 %v480_v37, %v479_v35 }
  0xb6   : > { %v461_v40 = vpop.f32.mrf.mxu2 }
  0xb7   : > { %v462_v41 = vadd.f32 %v864_v25, %v461_v40  ;;  %579 = vmatmul.bf16.vlgmr.msra.gmra.mxu1 %v495_v39 }
  0xb8   : > { %v444_v48 = vpop.f32.mrf.mxu0 }
  0xb9   : > { %v488_v50 = vmax.f32 %v462_v41, 0.0  ;;  %v445_v52 = vadd.f32 %v864_v25, %v444_v48 }
  0xbb   : > { %v499_v51 = vpack.c.bf16 %v488_v50, %v487_v49  ;;  %v481_v55 = vmax.f32 %v445_v52, 0.0 }
  0xbd   : > { %599 = vmatmul.bf16.vlgmr.msra.gmra.mxu3 %v499_v51 }
  0xbe   : > { %v464_v53 = vpop.f32.mrf.mxu2 }
  0xbf   : > { %v465_v58 = vadd.f32 %v864_v25, %v464_v53 }
  0xc0   : > { %v446_v54 = vpop.f32.mrf.mxu0 }
  0xc1   : > { %v447_v56 = vadd.f32 %v864_v25, %v446_v54  ;;  %v489_v12 = vmax.f32 %v465_v58, 0.0  ;;  %v1098_v54 = vld [vmem:[%s1179_s6] ss:$0 sm:$0xff] }
  0xc3   : > { %v482_v57 = vmax.f32 %v447_v56, 0.0 }
  0xc5   : > { %v496_v59 = vpack.c.bf16 %v482_v57, %v481_v55 }
  0xc6   : > { %v466_v60 = vpop.f32.mrf.mxu2 }
  0xc7   : > { %v467_v61 = vadd.f32 %v864_v25, %v466_v60  ;;  %584 = vmatmul.bf16.gmra.mxu1 %v496_v59 }
  0xc8   : > { %v449_v4 = vpop.f32.mrf.mxu0 }
  0xc9   : > { %v490_v13 = vmax.f32 %v467_v61, 0.0  ;;  %v450_v16 = vadd.f32 %v864_v25, %v449_v4 }
  0xcb   : > { %v500_v14 = vpack.c.bf16 %v490_v13, %v489_v12  ;;  %v483_v19 = vmax.f32 %v450_v16, 0.0 }
  0xcd   : > { %604 = vmatmul.bf16.gmra.mxu3 %v500_v14 }
  0xce   : > { %v469_v17 = vpop.f32.mrf.mxu2 }
  0xcf   : > { %v470_v22 = vadd.f32 %v864_v25, %v469_v17 }
  0xd0   : > { %v451_v18 = vpop.f32.mrf.mxu0 }
  0xd1   : > { %v452_v20 = vadd.f32 %v864_v25, %v451_v18  ;;  %v491_v32 = vmax.f32 %v470_v22, 0.0 }
  0xd3   : > { %v484_v21 = vmax.f32 %v452_v20, 0.0 }
  0xd5   : > { %v497_v9 = vpack.c.bf16 %v484_v21, %v483_v19 }
  0xd6   : > { %v471_v15 = vpop.f32.mrf.mxu2 }
  0xd7   : > { %v472_v23 = vadd.f32 %v864_v25, %v471_v15  ;;  %589 = vmatmul.bf16.gmra.mxu1 %v497_v9 }
  0xd8   : > { %v454_v24 = vpop.f32.mrf.mxu0 }
  0xd9   : > { %v492_v33 = vmax.f32 %v472_v23, 0.0  ;;  %v455_v35 = vadd.f32 %v864_v25, %v454_v24 }
  0xdb   : > { %v501_v34 = vpack.c.bf16 %v492_v33, %v491_v32  ;;  %v485_v38 = vmax.f32 %v455_v35, 0.0 }
  0xdd   : > { %609 = vmatmul.bf16.gmra.mxu3 %v501_v34 }
  0xde   : > { %v474_v36 = vpop.f32.mrf.mxu2 }
  0xdf   : > { %v475_v41 = vadd.f32 %v864_v25, %v474_v36 }
  0xe0   : > { %v456_v37 = vpop.f32.mrf.mxu0 }
  0xe1   : > { %v457_v39 = vadd.f32 %v864_v25, %v456_v37  ;;  %v493_v51 = vmax.f32 %v475_v41, 0.0 }
  0xe3   : > { %v486_v40 = vmax.f32 %v457_v39, 0.0 }
  0xe5   : > { %v498_v48 = vpack.c.bf16 %v486_v40, %v485_v38 }
  0xe6   : > { %v476_v49 = vpop.f32.mrf.mxu2 }
  0xe7   : > { %v477_v50 = vadd.f32 %v864_v25, %v476_v49  ;;  %594 = vmatmul.bf16.gmra.mxu1 %v498_v48 }
  0xe9   : > { %v494_v52 = vmax.f32 %v477_v50, 0.0 }
  0xeb   : > { %v502_v53 = vpack.c.bf16 %v494_v52, %v493_v51 }
  0xed   : > { %614 = vmatmul.bf16.gmra.mxu3 %v502_v53 }
 0x134   : > { %v580_v55 = vpop.f32.mrf.mxu1 }
 0x135   : > { %v581_v56 = vadd.f32 %v1098_v54, %v580_v55 }
 0x137   : > { %v620_v25 = vadd.f32 %v801_v7, %v581_v56 }
 0x139   : > { %636 = vst [vmem:[%s1105_s9] sm:$0xff] %v620_v25 }
 0x13c   : > { %v582_v57 = vpop.f32.mrf.mxu1 }
 0x13d   : > { %v583_v58 = vadd.f32 %v1098_v54, %v582_v57 }
 0x13f   : > { %v621_v59 = vadd.f32 %v802_v8, %v583_v58 }
 0x140   : > { %v600_v60 = vpop.f32.mrf.mxu3 }
 0x141   : > { %637 = vst [vmem:[%s1105_s9 + $0x8] sm:$0xff] %v621_v59  ;;  %v601_v61 = vadd.f32 %v1098_v54, %v600_v60 }
 0x143   : > { %v628_v4 = vadd.f32 %v817_v10, %v601_v61 }
 0x144   : > { %v585_v12 = vpop.f32.mrf.mxu1 }
 0x145   : > { %644 = vst [vmem:[%s1105_s9 + $0x40] sm:$0xff] %v628_v4  ;;  %v586_v7 = vadd.f32 %v1098_v54, %v585_v12 }
 0x147   : > { %v622_v13 = vadd.f32 %v805_v28, %v586_v7 }
 0x148   : > { %v602_v14 = vpop.f32.mrf.mxu3 }
 0x149   : > { %638 = vst [vmem:[%s1105_s9 + $0x10] sm:$0xff] %v622_v13  ;;  %v603_v5 = vadd.f32 %v1098_v54, %v602_v14 }
 0x14b   : > { %v629_v8 = vadd.f32 %v818_v11, %v603_v5 }
 0x14c   : > { %v587_v16 = vpop.f32.mrf.mxu1 }
 0x14d   : > { %645 = vst [vmem:[%s1105_s9 + $0x48] sm:$0xff] %v629_v8  ;;  %v588_v10 = vadd.f32 %v1098_v54, %v587_v16 }
 0x14f   : > { %v623_v17 = vadd.f32 %v806_v29, %v588_v10 }
 0x150   : > { %v605_v18 = vpop.f32.mrf.mxu3 }
 0x151   : > { %639 = vst [vmem:[%s1105_s9 + $0x18] sm:$0xff] %v623_v17  ;;  %v606_v28 = vadd.f32 %v1098_v54, %v605_v18 }
 0x153   : > { %v630_v19 = vadd.f32 %v821_v30, %v606_v28 }
 0x154   : > { %v590_v20 = vpop.f32.mrf.mxu1 }
 0x155   : > { %646 = vst [vmem:[%s1105_s9 + $0x50] sm:$0xff] %v630_v19  ;;  %v591_v6 = vadd.f32 %v1098_v54, %v590_v20 }
 0x157   : > { %v624_v11 = vadd.f32 %v809_v44, %v591_v6 }
 0x158   : > { %v607_v21 = vpop.f32.mrf.mxu3 }
 0x159   : > { %640 = vst [vmem:[%s1105_s9 + $0x20] sm:$0xff] %v624_v11  ;;  %v608_v26 = vadd.f32 %v1098_v54, %v607_v21 }
 0x15b   : > { %v631_v29 = vadd.f32 %v822_v31, %v608_v26 }
 0x15c   : > { %v592_v22 = vpop.f32.mrf.mxu1 }
 0x15d   : > { %647 = vst [vmem:[%s1105_s9 + $0x58] sm:$0xff] %v631_v29  ;;  %v593_v30 = vadd.f32 %v1098_v54, %v592_v22 }
 0x15f   : > { %v625_v9 = vadd.f32 %v810_v45, %v593_v30 }
 0x160   : > { %v610_v15 = vpop.f32.mrf.mxu3 }
 0x161   : > { %641 = vst [vmem:[%s1105_s9 + $0x28] sm:$0xff] %v625_v9  ;;  %v611_v44 = vadd.f32 %v1098_v54, %v610_v15 }
 0x163   : > { %v632_v23 = vadd.f32 %v825_v46, %v611_v44 }
 0x164   : > { %v595_v24 = vpop.f32.mrf.mxu1 }
 0x165   : > { %648 = vst [vmem:[%s1105_s9 + $0x60] sm:$0xff] %v632_v23  ;;  %v596_v27 = vadd.f32 %v1098_v54, %v595_v24 }
 0x167   : > { %v626_v31 = vadd.f32 %v813_v0, %v596_v27 }
 0x168   : > { %v612_v32 = vpop.f32.mrf.mxu3 }
 0x169   : > { %642 = vst [vmem:[%s1105_s9 + $0x30] sm:$0xff] %v626_v31  ;;  %v613_v42 = vadd.f32 %v1098_v54, %v612_v32 }
 0x16b   : > { %v633_v45 = vadd.f32 %v826_v47, %v613_v42 }
 0x16c   : > { %v597_v33 = vpop.f32.mrf.mxu1 }
 0x16d   : > { %649 = vst [vmem:[%s1105_s9 + $0x68] sm:$0xff] %v633_v45  ;;  %v598_v46 = vadd.f32 %v1098_v54, %v597_v33 }
 0x16f   : > { %v627_v34 = vadd.f32 %v814_v1, %v598_v46 }
 0x170   : > { %v615_v35 = vpop.f32.mrf.mxu3 }
 0x171   : > { %643 = vst [vmem:[%s1105_s9 + $0x38] sm:$0xff] %v627_v34  ;;  %v616_v36 = vadd.f32 %v1098_v54, %v615_v35 }
 0x173   : > { %v634_v0 = vadd.f32 %v829_v2, %v616_v36 }
 0x175   : > { %650 = vst [vmem:[%s1105_s9 + $0x70] sm:$0xff] %v634_v0 }
 0x178   : > { %v617_v37 = vpop.f32.mrf.mxu3 }
 0x179   : > { %v618_v38 = vadd.f32 %v1098_v54, %v617_v37 }
 0x17b   : > { %v635_v43 = vadd.f32 %v830_v3, %v618_v38 }
 0x17d   : > { %651 = vst [vmem:[%s1105_s9 + $0x78] sm:$0xff] %v635_v43 }
 0x17e PF: > { %s17_s24 = sadd.s32 1, %s872_s24  }
 0x17f   : > { %p14_p4 = scmp.ge.s32.totalorder %s17_s24, 4  }
 0x181   :  { %16 = sbr.rel (!%p14_p4) target bundleno = 1 (0x1), region = 78 }

</bundles_post_ra>
